<compile_context>
chip_gen: v7x
topology: tpu7x:2x2x1
jax: 0.10.0
libtpu: 0.0.40
codegen_flags: <defaults>
</compile_context>

<pallas_src>
import functools

import numpy as np
import jax
import jax.numpy as jnp
from jax import lax
from jax.experimental import pallas as pl
from jax.experimental.pallas import tpu as pltpu


# ----------------------------------------------------------------------------
# Host/XLA-side constant preprocessing (tiny, done once per call).
# ----------------------------------------------------------------------------
def _banded_weight(w_hwio, w_in, stride):
    """(3,3,Cin,Cout) conv weight -> (3, W*Cin, Wo*Cout) banded form.

    Built on the UNPADDED row-slab (width W*Cin): taps that would read the
    zero column-padding are omitted (they contribute nothing), so the kernel
    needs no padded scratch and all VMEM accesses stay lane-aligned.
        B[dy][p*Cin + c, wo*Cout + co] = w[dy, p - stride*wo + 1, c, co]
    whenever 0 <= p - stride*wo + 1 <= 2, else 0.
    """
    kh, kw, cin, cout = w_hwio.shape
    assert (kh, kw) == (3, 3)
    w_out = w_in // stride
    place = np.zeros((3, w_in, w_out), np.float32)
    for dx in range(3):
        for wo in range(w_out):
            p = stride * wo + dx - 1
            if 0 <= p < w_in:
                place[dx, p, wo] = 1.0
    b = jnp.einsum("xpw,yxcd->ypcwd", jnp.asarray(place),
                   w_hwio.astype(jnp.float32))
    return b.reshape(3, w_in * cin, w_out * cout)


def _row_select(nb, h_in, h_out, stride):
    """Stacked 0/1 row-selection matrix (3*nb*h_out, nb*h_in), bf16.

    Row dy*nb*h_out + n*h_out + ho picks input row n*h_in + (stride*ho + dy - 1)
    of the stacked (nb*h_in)-row activation slab; out-of-range rows are all-zero
    (this IS the zero row-padding).  One MXU matmul applies row stride, row halo
    and per-image packing for all 3 kernel rows at once.
    """
    sel = np.zeros((3, nb * h_out, nb * h_in), np.float32)
    for dy in range(3):
        for n in range(nb):
            for ho in range(h_out):
                hi = stride * ho + dy - 1
                if 0 <= hi < h_in:
                    sel[dy, n * h_out + ho, n * h_in + hi] = 1.0
    return jnp.asarray(sel.reshape(3 * nb * h_out, nb * h_in),
                       dtype=jnp.bfloat16)


def _tiled(v, w_out):
    """Per-channel BN vector -> (1, w_out*Cout) matching the lane-dense layout."""
    return jnp.tile(v.astype(jnp.float32), w_out).reshape(1, -1)


# ----------------------------------------------------------------------------
# Kernel bodies (one grid step == Nb batch elements, everything on the MXU)
# ----------------------------------------------------------------------------
def _conv3x3(slab, w_ref, M):
    """3 banded matmuls, bf16 in / f32 accumulate. slab: (3*M, K) bf16."""
    return (jnp.dot(slab[0 * M:1 * M], w_ref[0], preferred_element_type=jnp.float32)
            + jnp.dot(slab[1 * M:2 * M], w_ref[1], preferred_element_type=jnp.float32)
            + jnp.dot(slab[2 * M:3 * M], w_ref[2], preferred_element_type=jnp.float32))


def _basic_block_kernel(x_ref, sel1_ref, w1_ref, s1_ref, b1_ref,
                        sel2_ref, w2_ref, s2_ref, b2_ref, out_ref,
                        *, Nb, H, Ho, M, lane_out):
    """downsample=False: conv1+BN+ReLU -> conv2+BN for Nb images, fused."""
    bf16 = jnp.bfloat16
    wc = x_ref.shape[-1]
    # (Nb, H, W*Cin) -> (Nb*H, W*Cin): leading-dim merge, layout preserving.
    x2 = x_ref[...].reshape(Nb * H, wc)

    # conv1: stacked row-selection matmul + 3 banded matmuls.
    slab1 = jnp.dot(sel1_ref[...], x2,
                    preferred_element_type=jnp.float32).astype(bf16)
    y1 = _conv3x3(slab1, w1_ref, M)
    y1 = jnp.maximum(y1 * s1_ref[...] + b1_ref[...], 0.0).astype(bf16)   # BN1+ReLU

    # conv2 (stride 1) on y1.
    slab2 = jnp.dot(sel2_ref[...], y1,
                    preferred_element_type=jnp.float32).astype(bf16)
    y2 = _conv3x3(slab2, w2_ref, M)
    y2 = y2 * s2_ref[...] + b2_ref[...]                                   # BN2
    out_ref[...] = y2.reshape(Nb, Ho, lane_out).astype(out_ref.dtype)


def _basic_block_down_kernel(x_ref, sel1_ref, w1_ref, s1_ref, b1_ref,
                             sel2_ref, w2_ref, s2_ref, b2_ref,
                             wd_ref, sd_ref, bd_ref, out_ref,
                             *, Nb, H, Ho, M, lane_out):
    """downsample=True: conv1(s2)+BN+ReLU -> conv2+BN, plus convd(s2)+BN
    residual branch and the final add -- fully fused; the stride-2 row
    selection slab is computed once and shared by conv1 and convd."""
    bf16 = jnp.bfloat16
    wc = x_ref.shape[-1]
    x2 = x_ref[...].reshape(Nb * H, wc)

    slab1 = jnp.dot(sel1_ref[...], x2,
                    preferred_element_type=jnp.float32).astype(bf16)
    y1 = _conv3x3(slab1, w1_ref, M)                                       # main
    yd = _conv3x3(slab1, wd_ref, M)                                       # residual
    y1 = jnp.maximum(y1 * s1_ref[...] + b1_ref[...], 0.0).astype(bf16)    # BN1+ReLU
    yd = yd * sd_ref[...] + bd_ref[...]                                   # BNd

    slab2 = jnp.dot(sel2_ref[...], y1,
                    preferred_element_type=jnp.float32).astype(bf16)
    y2 = _conv3x3(slab2, w2_ref, M)
    y2 = y2 * s2_ref[...] + b2_ref[...] + yd                              # BN2 + add
    out_ref[...] = y2.reshape(Nb, Ho, lane_out).astype(out_ref.dtype)


# ----------------------------------------------------------------------------
# Fused Basic_block forward (single pallas_call)
# ----------------------------------------------------------------------------
def basic_block_forward(x_nhwc, params, downsample, batch_block=None):
    """x_nhwc: (N, H, W, Cin) float32 -> (N, Hout, Wout, Cout) float32."""
    N, H, W, Cin = x_nhwc.shape
    Cout = params["conv1_w"].shape[-1]
    s = 2 if downsample else 1
    assert H % s == 0 and W % s == 0, "downsample path assumes even H, W"
    Ho, Wo = H // s, W // s
    lane_out = Wo * Cout
    # NOTE: at the toy downsample size lane_out = 64 (<128 lanes) so the output
    # stores are masked; at real ResNet widths Wo*Cout >= 128 and this goes
    # away.  Packing 2 rows per lane would need an in-kernel lane-widening
    # reshape, skipped here for robustness.

    # Batch packing: largest Nb | N with Nb*H <= 256 that still leaves >= 2
    # grid steps (keeps both v7x TensorCores busy).
    if batch_block is None:
        batch_block = 1
        for nb in range(1, N + 1):
            if N % nb == 0 and nb * H <= 256 and (N // nb) >= 2:
                batch_block = nb
    Nb = batch_block
    assert N % Nb == 0
    G = N // Nb
    M = Nb * Ho
    bf16 = jnp.bfloat16

    # Host/XLA-side constants (banded weights, row selectors, folded BN).
    w1b = _banded_weight(params["conv1_w"], W, s).astype(bf16)   # (3, W*Cin, lane_out)
    w2b = _banded_weight(params["conv2_w"], Wo, 1).astype(bf16)  # (3, Wo*Cout, lane_out)
    sel1 = _row_select(Nb, H, Ho, s)                             # (3*M, Nb*H)
    sel2 = _row_select(Nb, Ho, Ho, 1)                            # (3*M, Nb*Ho)
    s1 = _tiled(params["bn1_scale"], Wo); b1 = _tiled(params["bn1_bias"], Wo)
    s2 = _tiled(params["bn2_scale"], Wo); b2 = _tiled(params["bn2_bias"], Wo)

    # Activations (N, H, W, Cin) -> (N, H, W*Cin) bf16 (free reshape + cast,
    # halves the kernel's HBM read traffic).
    x2d = x_nhwc.reshape(N, H, W * Cin).astype(bf16)

    def cspec(arr):  # constant operand: full block, never re-fetched
        shp = arr.shape
        return pl.BlockSpec(shp, lambda g, _r=len(shp): (0,) * _r)

    in_specs = [pl.BlockSpec((Nb, H, W * Cin), lambda g: (g, 0, 0)),
                cspec(sel1), cspec(w1b), cspec(s1), cspec(b1),
                cspec(sel2), cspec(w2b), cspec(s2), cspec(b2)]
    args = [x2d, sel1, w1b, s1, b1, sel2, w2b, s2, b2]

    if downsample:
        wdb = _banded_weight(params["convd_w"], W, 2).astype(bf16)
        sd = _tiled(params["bnd_scale"], Wo); bd = _tiled(params["bnd_bias"], Wo)
        in_specs += [cspec(wdb), cspec(sd), cspec(bd)]
        args += [wdb, sd, bd]
        kernel = functools.partial(_basic_block_down_kernel,
                                   Nb=Nb, H=H, Ho=Ho, M=M, lane_out=lane_out)
    else:
        kernel = functools.partial(_basic_block_kernel,
                                   Nb=Nb, H=H, Ho=Ho, M=M, lane_out=lane_out)

    out3d = pl.pallas_call(
        kernel,
        out_shape=jax.ShapeDtypeStruct((N, Ho, lane_out), jnp.float32),
        grid=(G,),
        in_specs=in_specs,
        out_specs=pl.BlockSpec((Nb, Ho, lane_out), lambda g: (g, 0, 0)),
        compiler_params=pltpu.CompilerParams(
            dimension_semantics=("parallel",),
            vmem_limit_bytes=32 * 1024 * 1024),
    )(*args)

    # lane-dense slab back to NHWC (free reshape)
    return out3d.reshape(N, Ho, Wo, Cout)


# ----------------------------------------------------------------------------
# Deterministic parameter initialization (folded eval-mode BN)
# ----------------------------------------------------------------------------
def _fold_bn(gamma, beta, mean, var, eps=1e-5):
    scale = gamma / jnp.sqrt(var + eps)
    bias = beta - mean * scale
    return scale, bias


def init_params(key, cin, cout, downsample):
    ks = jax.random.split(key, 16)
    params = {}

    def bn_params(k0, k1, k2, k3, c):
        gamma = jax.random.uniform(k0, (c,), minval=0.5, maxval=1.5)
        beta = 0.1 * jax.random.normal(k1, (c,))
        mean = 0.1 * jax.random.normal(k2, (c,))
        var = jax.random.uniform(k3, (c,), minval=0.5, maxval=1.5)
        return _fold_bn(gamma, beta, mean, var)

    params["conv1_w"] = 0.1 * jax.random.normal(ks[0], (3, 3, cin, cout))
    params["bn1_scale"], params["bn1_bias"] = bn_params(ks[1], ks[2], ks[3], ks[4], cout)

    params["conv2_w"] = 0.1 * jax.random.normal(ks[5], (3, 3, cout, cout))
    params["bn2_scale"], params["bn2_bias"] = bn_params(ks[6], ks[7], ks[8], ks[9], cout)

    if downsample:
        params["convd_w"] = 0.1 * jax.random.normal(ks[10], (3, 3, cin, cout))
        params["bnd_scale"], params["bnd_bias"] = bn_params(ks[11], ks[12], ks[13], ks[14], cout)
    return jax.tree.map(lambda a: a.astype(jnp.float32), params)


# ----------------------------------------------------------------------------
# Pure-JAX reference (for correctness check)
# ----------------------------------------------------------------------------
def _ref_conv_bn(x, w, scale, bias, stride, relu):
    y = lax.conv_general_dilated(
        x, w, window_strides=(stride, stride), padding=((1, 1), (1, 1)),
        dimension_numbers=("NHWC", "HWIO", "NHWC"))
    y = y * scale + bias
    return jnp.maximum(y, 0.0) if relu else y


def reference_forward(x, params, downsample):
    s = 2 if downsample else 1
    out1 = _ref_conv_bn(x, params["conv1_w"], params["bn1_scale"],
                        params["bn1_bias"], s, relu=True)
    out2 = _ref_conv_bn(out1, params["conv2_w"], params["bn2_scale"],
                        params["bn2_bias"], 1, relu=False)
    if downsample:
        down = _ref_conv_bn(x, params["convd_w"], params["bnd_scale"],
                            params["bnd_bias"], 2, relu=False)
        out2 = out2 + down
    return out2


# ----------------------------------------------------------------------------
if __name__ == "__main__":
    key = jax.random.PRNGKey(0)
    kx, kp1, kp2 = jax.random.split(key, 3)

    # N=4 so the batch-packed grid (Nb=2) still has 2 steps (v7x megacore).
    N, Cin, H, W = 4, 4, 16, 16
    Cout = 8

    # PyTorch-convention NCHW input, transposed once to the kernel's NHWC layout.
    x_nchw = jax.random.normal(kx, (N, Cin, H, W), dtype=jnp.float32)
    x = jnp.transpose(x_nchw, (0, 2, 3, 1))

    # --- downsample=True branch ---
    params_d = init_params(kp1, Cin, Cout, downsample=True)
    out_d = basic_block_forward(x, params_d, downsample=True, batch_block=2)
    out_d = jax.block_until_ready(out_d)
    ref_d = reference_forward(x, params_d, downsample=True)
    assert out_d.shape == (N, H // 2, W // 2, Cout)
    # bf16 MXU inputs (f32 accumulation) -> loosened tolerance vs the f32 path.
    assert jnp.allclose(out_d, ref_d, rtol=5e-2, atol=5e-2), "downsample mismatch"

    # --- downsample=False branch ---
    params_n = init_params(kp2, Cin, Cout, downsample=False)
    out_n = basic_block_forward(x, params_n, downsample=False, batch_block=2)
    out_n = jax.block_until_ready(out_n)
    ref_n = reference_forward(x, params_n, downsample=False)
    assert out_n.shape == (N, H, W, Cout)
    assert jnp.allclose(out_n, ref_n, rtol=5e-2, atol=5e-2), "no-downsample mismatch"

    print("KERNEL_OK")
</pallas_src>

<mosaic_0001>
module attributes {stable_mosaic.version = 11 : i64} {
  func.func @_basic_block_down_kernel(%arg0: i32, %arg1: memref<2x16x64xbf16, #tpu.memory_space<vmem>>, %arg2: memref<48x32xbf16, #tpu.memory_space<vmem>>, %arg3: memref<3x64x64xbf16, #tpu.memory_space<vmem>>, %arg4: memref<1x64xf32, #tpu.memory_space<vmem>>, %arg5: memref<1x64xf32, #tpu.memory_space<vmem>>, %arg6: memref<48x16xbf16, #tpu.memory_space<vmem>>, %arg7: memref<3x64x64xbf16, #tpu.memory_space<vmem>>, %arg8: memref<1x64xf32, #tpu.memory_space<vmem>>, %arg9: memref<1x64xf32, #tpu.memory_space<vmem>>, %arg10: memref<3x64x64xbf16, #tpu.memory_space<vmem>>, %arg11: memref<1x64xf32, #tpu.memory_space<vmem>>, %arg12: memref<1x64xf32, #tpu.memory_space<vmem>>, %arg13: memref<2x8x64xf32, #tpu.memory_space<vmem>>) attributes {dimension_semantics = [#tpu.dimension_semantics<parallel>], iteration_bounds = array<i64: 2>, scalar_prefetch = 0 : i64, scratch_operands = 0 : i64, tpu.core_type = #tpu.core_type<tc>, window_params = [{transform_indices = @transform_0, window_bounds = array<i64: 2, 16, 64>}, {pipeline_mode = #tpu.pipeline_mode<synchronous>, transform_indices = @transform_1, window_bounds = array<i64: 48, 32>}, {pipeline_mode = #tpu.pipeline_mode<synchronous>, transform_indices = @transform_2, window_bounds = array<i64: 3, 64, 64>}, {pipeline_mode = #tpu.pipeline_mode<synchronous>, transform_indices = @transform_3, window_bounds = array<i64: 1, 64>}, {pipeline_mode = #tpu.pipeline_mode<synchronous>, transform_indices = @transform_4, window_bounds = array<i64: 1, 64>}, {pipeline_mode = #tpu.pipeline_mode<synchronous>, transform_indices = @transform_5, window_bounds = array<i64: 48, 16>}, {pipeline_mode = #tpu.pipeline_mode<synchronous>, transform_indices = @transform_6, window_bounds = array<i64: 3, 64, 64>}, {pipeline_mode = #tpu.pipeline_mode<synchronous>, transform_indices = @transform_7, window_bounds = array<i64: 1, 64>}, {pipeline_mode = #tpu.pipeline_mode<synchronous>, transform_indices = @transform_8, window_bounds = array<i64: 1, 64>}, {pipeline_mode = #tpu.pipeline_mode<synchronous>, transform_indices = @transform_9, window_bounds = array<i64: 3, 64, 64>}, {pipeline_mode = #tpu.pipeline_mode<synchronous>, transform_indices = @transform_10, window_bounds = array<i64: 1, 64>}, {pipeline_mode = #tpu.pipeline_mode<synchronous>, transform_indices = @transform_11, window_bounds = array<i64: 1, 64>}, {transform_indices = @transform_12, window_bounds = array<i64: 2, 8, 64>}]} {
    %c0 = arith.constant 0 : index
    %c0_0 = arith.constant 0 : index
    %c0_1 = arith.constant 0 : index
    %0 = vector.load %arg1[%c0, %c0_0, %c0_1] : memref<2x16x64xbf16, #tpu.memory_space<vmem>>, vector<2x16x64xbf16>
    %1 = vector.shape_cast %0 : vector<2x16x64xbf16> to vector<32x64xbf16>
    %c0_2 = arith.constant 0 : index
    %c0_3 = arith.constant 0 : index
    %2 = vector.load %arg2[%c0_2, %c0_3] : memref<48x32xbf16, #tpu.memory_space<vmem>>, vector<48x32xbf16>
    %cst = arith.constant dense<0.000000e+00> : vector<48x64xf32>
    %3 = tpu.matmul %2, %1, %cst {dimension_numbers = #tpu.dot_dimension_numbers<[1], [0], [0], [1], [0, 0, 1, 1], [], []>} : vector<48x32xbf16>, vector<32x64xbf16>, vector<48x64xf32> -> vector<48x64xf32>
    %4 = arith.truncf %3 : vector<48x64xf32> to vector<48x64xbf16>
    %5 = vector.extract_strided_slice %4 {offsets = [0, 0], sizes = [16, 64], strides = [1, 1]} : vector<48x64xbf16> to vector<16x64xbf16>
    %c0_4 = arith.constant 0 : index
    %c0_5 = arith.constant 0 : index
    %c0_6 = arith.constant 0 : index
    %6 = vector.load %arg3[%c0_4, %c0_5, %c0_6] : memref<3x64x64xbf16, #tpu.memory_space<vmem>>, vector<1x64x64xbf16>
    %7 = vector.shape_cast %6 : vector<1x64x64xbf16> to vector<64x64xbf16>
    %cst_7 = arith.constant dense<0.000000e+00> : vector<16x64xf32>
    %8 = tpu.matmul %5, %7, %cst_7 {dimension_numbers = #tpu.dot_dimension_numbers<[1], [0], [0], [1], [0, 0, 1, 1], [], []>} : vector<16x64xbf16>, vector<64x64xbf16>, vector<16x64xf32> -> vector<16x64xf32>
    %9 = vector.extract_strided_slice %4 {offsets = [16, 0], sizes = [16, 64], strides = [1, 1]} : vector<48x64xbf16> to vector<16x64xbf16>
    %c1 = arith.constant 1 : index
    %c0_8 = arith.constant 0 : index
    %c0_9 = arith.constant 0 : index
    %10 = vector.load %arg3[%c1, %c0_8, %c0_9] : memref<3x64x64xbf16, #tpu.memory_space<vmem>>, vector<1x64x64xbf16>
    %11 = vector.shape_cast %10 : vector<1x64x64xbf16> to vector<64x64xbf16>
    %cst_10 = arith.constant dense<0.000000e+00> : vector<16x64xf32>
    %12 = tpu.matmul %9, %11, %cst_10 {dimension_numbers = #tpu.dot_dimension_numbers<[1], [0], [0], [1], [0, 0, 1, 1], [], []>} : vector<16x64xbf16>, vector<64x64xbf16>, vector<16x64xf32> -> vector<16x64xf32>
    %13 = arith.addf %8, %12 : vector<16x64xf32>
    %14 = vector.extract_strided_slice %4 {offsets = [32, 0], sizes = [16, 64], strides = [1, 1]} : vector<48x64xbf16> to vector<16x64xbf16>
    %c2 = arith.constant 2 : index
    %c0_11 = arith.constant 0 : index
    %c0_12 = arith.constant 0 : index
    %15 = vector.load %arg3[%c2, %c0_11, %c0_12] : memref<3x64x64xbf16, #tpu.memory_space<vmem>>, vector<1x64x64xbf16>
    %16 = vector.shape_cast %15 : vector<1x64x64xbf16> to vector<64x64xbf16>
    %cst_13 = arith.constant dense<0.000000e+00> : vector<16x64xf32>
    %17 = tpu.matmul %14, %16, %cst_13 {dimension_numbers = #tpu.dot_dimension_numbers<[1], [0], [0], [1], [0, 0, 1, 1], [], []>} : vector<16x64xbf16>, vector<64x64xbf16>, vector<16x64xf32> -> vector<16x64xf32>
    %18 = arith.addf %13, %17 : vector<16x64xf32>
    %19 = vector.extract_strided_slice %4 {offsets = [0, 0], sizes = [16, 64], strides = [1, 1]} : vector<48x64xbf16> to vector<16x64xbf16>
    %c0_14 = arith.constant 0 : index
    %c0_15 = arith.constant 0 : index
    %c0_16 = arith.constant 0 : index
    %20 = vector.load %arg10[%c0_14, %c0_15, %c0_16] : memref<3x64x64xbf16, #tpu.memory_space<vmem>>, vector<1x64x64xbf16>
    %21 = vector.shape_cast %20 : vector<1x64x64xbf16> to vector<64x64xbf16>
    %cst_17 = arith.constant dense<0.000000e+00> : vector<16x64xf32>
    %22 = tpu.matmul %19, %21, %cst_17 {dimension_numbers = #tpu.dot_dimension_numbers<[1], [0], [0], [1], [0, 0, 1, 1], [], []>} : vector<16x64xbf16>, vector<64x64xbf16>, vector<16x64xf32> -> vector<16x64xf32>
    %23 = vector.extract_strided_slice %4 {offsets = [16, 0], sizes = [16, 64], strides = [1, 1]} : vector<48x64xbf16> to vector<16x64xbf16>
    %c1_18 = arith.constant 1 : index
    %c0_19 = arith.constant 0 : index
    %c0_20 = arith.constant 0 : index
    %24 = vector.load %arg10[%c1_18, %c0_19, %c0_20] : memref<3x64x64xbf16, #tpu.memory_space<vmem>>, vector<1x64x64xbf16>
    %25 = vector.shape_cast %24 : vector<1x64x64xbf16> to vector<64x64xbf16>
    %cst_21 = arith.constant dense<0.000000e+00> : vector<16x64xf32>
    %26 = tpu.matmul %23, %25, %cst_21 {dimension_numbers = #tpu.dot_dimension_numbers<[1], [0], [0], [1], [0, 0, 1, 1], [], []>} : vector<16x64xbf16>, vector<64x64xbf16>, vector<16x64xf32> -> vector<16x64xf32>
    %27 = arith.addf %22, %26 : vector<16x64xf32>
    %28 = vector.extract_strided_slice %4 {offsets = [32, 0], sizes = [16, 64], strides = [1, 1]} : vector<48x64xbf16> to vector<16x64xbf16>
    %c2_22 = arith.constant 2 : index
    %c0_23 = arith.constant 0 : index
    %c0_24 = arith.constant 0 : index
    %29 = vector.load %arg10[%c2_22, %c0_23, %c0_24] : memref<3x64x64xbf16, #tpu.memory_space<vmem>>, vector<1x64x64xbf16>
    %30 = vector.shape_cast %29 : vector<1x64x64xbf16> to vector<64x64xbf16>
    %cst_25 = arith.constant dense<0.000000e+00> : vector<16x64xf32>
    %31 = tpu.matmul %28, %30, %cst_25 {dimension_numbers = #tpu.dot_dimension_numbers<[1], [0], [0], [1], [0, 0, 1, 1], [], []>} : vector<16x64xbf16>, vector<64x64xbf16>, vector<16x64xf32> -> vector<16x64xf32>
    %32 = arith.addf %27, %31 : vector<16x64xf32>
    %c0_26 = arith.constant 0 : index
    %c0_27 = arith.constant 0 : index
    %33 = vector.load %arg4[%c0_26, %c0_27] : memref<1x64xf32, #tpu.memory_space<vmem>>, vector<1x64xf32>
    %34 = vector.broadcast %33 : vector<1x64xf32> to vector<16x64xf32>
    %35 = arith.mulf %18, %34 : vector<16x64xf32>
    %c0_28 = arith.constant 0 : index
    %c0_29 = arith.constant 0 : index
    %36 = vector.load %arg5[%c0_28, %c0_29] : memref<1x64xf32, #tpu.memory_space<vmem>>, vector<1x64xf32>
    %37 = vector.broadcast %36 : vector<1x64xf32> to vector<16x64xf32>
    %38 = arith.addf %35, %37 : vector<16x64xf32>
    %cst_30 = arith.constant 0.000000e+00 : f32
    %39 = vector.broadcast %cst_30 : f32 to vector<16x64xf32>
    %40 = arith.maximumf %38, %39 : vector<16x64xf32>
    %41 = arith.truncf %40 : vector<16x64xf32> to vector<16x64xbf16>
    %c0_31 = arith.constant 0 : index
    %c0_32 = arith.constant 0 : index
    %42 = vector.load %arg11[%c0_31, %c0_32] : memref<1x64xf32, #tpu.memory_space<vmem>>, vector<1x64xf32>
    %43 = vector.broadcast %42 : vector<1x64xf32> to vector<16x64xf32>
    %44 = arith.mulf %32, %43 : vector<16x64xf32>
    %c0_33 = arith.constant 0 : index
    %c0_34 = arith.constant 0 : index
    %45 = vector.load %arg12[%c0_33, %c0_34] : memref<1x64xf32, #tpu.memory_space<vmem>>, vector<1x64xf32>
    %46 = vector.broadcast %45 : vector<1x64xf32> to vector<16x64xf32>
    %47 = arith.addf %44, %46 : vector<16x64xf32>
    %c0_35 = arith.constant 0 : index
    %c0_36 = arith.constant 0 : index
    %48 = vector.load %arg6[%c0_35, %c0_36] : memref<48x16xbf16, #tpu.memory_space<vmem>>, vector<48x16xbf16>
    %cst_37 = arith.constant dense<0.000000e+00> : vector<48x64xf32>
    %49 = tpu.matmul %48, %41, %cst_37 {dimension_numbers = #tpu.dot_dimension_numbers<[1], [0], [0], [1], [0, 0, 1, 1], [], []>} : vector<48x16xbf16>, vector<16x64xbf16>, vector<48x64xf32> -> vector<48x64xf32>
    %50 = arith.truncf %49 : vector<48x64xf32> to vector<48x64xbf16>
    %51 = vector.extract_strided_slice %50 {offsets = [0, 0], sizes = [16, 64], strides = [1, 1]} : vector<48x64xbf16> to vector<16x64xbf16>
    %c0_38 = arith.constant 0 : index
    %c0_39 = arith.constant 0 : index
    %c0_40 = arith.constant 0 : index
    %52 = vector.load %arg7[%c0_38, %c0_39, %c0_40] : memref<3x64x64xbf16, #tpu.memory_space<vmem>>, vector<1x64x64xbf16>
    %53 = vector.shape_cast %52 : vector<1x64x64xbf16> to vector<64x64xbf16>
    %cst_41 = arith.constant dense<0.000000e+00> : vector<16x64xf32>
    %54 = tpu.matmul %51, %53, %cst_41 {dimension_numbers = #tpu.dot_dimension_numbers<[1], [0], [0], [1], [0, 0, 1, 1], [], []>} : vector<16x64xbf16>, vector<64x64xbf16>, vector<16x64xf32> -> vector<16x64xf32>
    %55 = vector.extract_strided_slice %50 {offsets = [16, 0], sizes = [16, 64], strides = [1, 1]} : vector<48x64xbf16> to vector<16x64xbf16>
    %c1_42 = arith.constant 1 : index
    %c0_43 = arith.constant 0 : index
    %c0_44 = arith.constant 0 : index
    %56 = vector.load %arg7[%c1_42, %c0_43, %c0_44] : memref<3x64x64xbf16, #tpu.memory_space<vmem>>, vector<1x64x64xbf16>
    %57 = vector.shape_cast %56 : vector<1x64x64xbf16> to vector<64x64xbf16>
    %cst_45 = arith.constant dense<0.000000e+00> : vector<16x64xf32>
    %58 = tpu.matmul %55, %57, %cst_45 {dimension_numbers = #tpu.dot_dimension_numbers<[1], [0], [0], [1], [0, 0, 1, 1], [], []>} : vector<16x64xbf16>, vector<64x64xbf16>, vector<16x64xf32> -> vector<16x64xf32>
    %59 = arith.addf %54, %58 : vector<16x64xf32>
    %60 = vector.extract_strided_slice %50 {offsets = [32, 0], sizes = [16, 64], strides = [1, 1]} : vector<48x64xbf16> to vector<16x64xbf16>
    %c2_46 = arith.constant 2 : index
    %c0_47 = arith.constant 0 : index
    %c0_48 = arith.constant 0 : index
    %61 = vector.load %arg7[%c2_46, %c0_47, %c0_48] : memref<3x64x64xbf16, #tpu.memory_space<vmem>>, vector<1x64x64xbf16>
    %62 = vector.shape_cast %61 : vector<1x64x64xbf16> to vector<64x64xbf16>
    %cst_49 = arith.constant dense<0.000000e+00> : vector<16x64xf32>
    %63 = tpu.matmul %60, %62, %cst_49 {dimension_numbers = #tpu.dot_dimension_numbers<[1], [0], [0], [1], [0, 0, 1, 1], [], []>} : vector<16x64xbf16>, vector<64x64xbf16>, vector<16x64xf32> -> vector<16x64xf32>
    %64 = arith.addf %59, %63 : vector<16x64xf32>
    %c0_50 = arith.constant 0 : index
    %c0_51 = arith.constant 0 : index
    %65 = vector.load %arg8[%c0_50, %c0_51] : memref<1x64xf32, #tpu.memory_space<vmem>>, vector<1x64xf32>
    %66 = vector.broadcast %65 : vector<1x64xf32> to vector<16x64xf32>
    %67 = arith.mulf %64, %66 : vector<16x64xf32>
    %c0_52 = arith.constant 0 : index
    %c0_53 = arith.constant 0 : index
    %68 = vector.load %arg9[%c0_52, %c0_53] : memref<1x64xf32, #tpu.memory_space<vmem>>, vector<1x64xf32>
    %69 = vector.broadcast %68 : vector<1x64xf32> to vector<16x64xf32>
    %70 = arith.addf %67, %69 : vector<16x64xf32>
    %71 = arith.addf %70, %47 : vector<16x64xf32>
    %72 = vector.shape_cast %71 : vector<16x64xf32> to vector<2x8x64xf32>
    %c0_54 = arith.constant 0 : index
    %c0_55 = arith.constant 0 : index
    %c0_56 = arith.constant 0 : index
    %73 = vector.load %arg13[%c0_54, %c0_55, %c0_56] : memref<2x8x64xf32, #tpu.memory_space<vmem>>, vector<2x8x64xf32>
    tpu.vector_store %arg13[%c0_54, %c0_55, %c0_56], %72 {strides = array<i32>} : memref<2x8x64xf32, #tpu.memory_space<vmem>>, vector<2x8x64xf32>,
    return
  }
  func.func @transform_0(%arg0: i32) -> (i32, i32, i32) {
    %c0_i32 = arith.constant 0 : i32
    %c0_i32_0 = arith.constant 0 : i32
    %c0_i32_1 = arith.constant 0 : i32
    return %arg0, %c0_i32, %c0_i32_0 : i32, i32, i32
  }
  func.func @transform_1(%arg0: i32) -> (i32, i32) {
    %c0_i32 = arith.constant 0 : i32
    %c0_i32_0 = arith.constant 0 : i32
    %c0_i32_1 = arith.constant 0 : i32
    return %c0_i32, %c0_i32_0 : i32, i32
  }
  func.func @transform_2(%arg0: i32) -> (i32, i32, i32) {
    %c0_i32 = arith.constant 0 : i32
    %c0_i32_0 = arith.constant 0 : i32
    %c0_i32_1 = arith.constant 0 : i32
    %c0_i32_2 = arith.constant 0 : i32
    return %c0_i32, %c0_i32_0, %c0_i32_1 : i32, i32, i32
  }
  func.func @transform_3(%arg0: i32) -> (i32, i32) {
    %c0_i32 = arith.constant 0 : i32
    %c0_i32_0 = arith.constant 0 : i32
    %c0_i32_1 = arith.constant 0 : i32
    return %c0_i32, %c0_i32_0 : i32, i32
  }
  func.func @transform_4(%arg0: i32) -> (i32, i32) {
    %c0_i32 = arith.constant 0 : i32
    %c0_i32_0 = arith.constant 0 : i32
    %c0_i32_1 = arith.constant 0 : i32
    return %c0_i32, %c0_i32_0 : i32, i32
  }
  func.func @transform_5(%arg0: i32) -> (i32, i32) {
    %c0_i32 = arith.constant 0 : i32
    %c0_i32_0 = arith.constant 0 : i32
    %c0_i32_1 = arith.constant 0 : i32
    return %c0_i32, %c0_i32_0 : i32, i32
  }
  func.func @transform_6(%arg0: i32) -> (i32, i32, i32) {
    %c0_i32 = arith.constant 0 : i32
    %c0_i32_0 = arith.constant 0 : i32
    %c0_i32_1 = arith.constant 0 : i32
    %c0_i32_2 = arith.constant 0 : i32
    return %c0_i32, %c0_i32_0, %c0_i32_1 : i32, i32, i32
  }
  func.func @transform_7(%arg0: i32) -> (i32, i32) {
    %c0_i32 = arith.constant 0 : i32
    %c0_i32_0 = arith.constant 0 : i32
    %c0_i32_1 = arith.constant 0 : i32
    return %c0_i32, %c0_i32_0 : i32, i32
  }
  func.func @transform_8(%arg0: i32) -> (i32, i32) {
    %c0_i32 = arith.constant 0 : i32
    %c0_i32_0 = arith.constant 0 : i32
    %c0_i32_1 = arith.constant 0 : i32
    return %c0_i32, %c0_i32_0 : i32, i32
  }
  func.func @transform_9(%arg0: i32) -> (i32, i32, i32) {
    %c0_i32 = arith.constant 0 : i32
    %c0_i32_0 = arith.constant 0 : i32
    %c0_i32_1 = arith.constant 0 : i32
    %c0_i32_2 = arith.constant 0 : i32
    return %c0_i32, %c0_i32_0, %c0_i32_1 : i32, i32, i32
  }
  func.func @transform_10(%arg0: i32) -> (i32, i32) {
    %c0_i32 = arith.constant 0 : i32
    %c0_i32_0 = arith.constant 0 : i32
    %c0_i32_1 = arith.constant 0 : i32
    return %c0_i32, %c0_i32_0 : i32, i32
  }
  func.func @transform_11(%arg0: i32) -> (i32, i32) {
    %c0_i32 = arith.constant 0 : i32
    %c0_i32_0 = arith.constant 0 : i32
    %c0_i32_1 = arith.constant 0 : i32
    return %c0_i32, %c0_i32_0 : i32, i32
  }
  func.func @transform_12(%arg0: i32) -> (i32, i32, i32) {
    %c0_i32 = arith.constant 0 : i32
    %c0_i32_0 = arith.constant 0 : i32
    %c0_i32_1 = arith.constant 0 : i32
    return %arg0, %c0_i32, %c0_i32_0 : i32, i32, i32
  }
}

</mosaic_0001>

<bundles_post_ra>
// kernel: tpu_custom_call.1
= control target key start
LH: loop header
LB: loop body
LE: loop exit
PB: predicated region body
PF: predicated region fallthrough
CT: control target
= control target key end

     0   :  { %s2592_s0 = inlined_call_operand.hbm [shape: bf16[4,16,64], index: 0, kind: input, shape index: {}]   ;;  %s2593_s1 = inlined_call_operand.vmem [shape: bf16[48,32], index: 1, kind: input, shape index: {}]   ;;  %s2594_s2 = inlined_call_operand.hbm [shape: bf16[3,64,64], index: 2, kind: input, shape index: {}]   ;;  %s2595_s3 = inlined_call_operand.vmem [shape: f32[1,64], index: 3, kind: input, shape index: {}]   ;;  %s2596_s4 = inlined_call_operand.vmem [shape: f32[1,64], index: 4, kind: input, shape index: {}]   ;;  %s2597_s5 = inlined_call_operand.vmem [shape: bf16[48,16], index: 5, kind: input, shape index: {}]   ;;  %s2598_s6 = inlined_call_operand.hbm [shape: bf16[3,64,64], index: 6, kind: input, shape index: {}]   ;;  %s2599_s7 = inlined_call_operand.vmem [shape: f32[1,64], index: 7, kind: input, shape index: {}]   ;;  %s2600_s8 = inlined_call_operand.vmem [shape: f32[1,64], index: 8, kind: input, shape index: {}]   ;;  %s2601_s9 = inlined_call_operand.vmem [shape: bf16[3,64,64], index: 9, kind: input, shape index: {}]   ;;  %s2602_s10 = inlined_call_operand.vmem [shape: f32[1,64], index: 10, kind: input, shape index: {}]   ;;  %s2603_s11 = inlined_call_operand.vmem [shape: f32[1,64], index: 11, kind: input, shape index: {}]   ;;  %s2604_s12 = inlined_call_operand.hbm [shape: f32[4,8,64], index: 12, kind: output, shape index: {}]  }
   0x1   :  { %2613 = sst [smem:[#allocation14_spill]] %s2600_s8 }
   0x2   :  { %2614 = sst [smem:[#allocation15_spill]] %s2604_s12 }
   0x3   :  { %17 = vsyncpa [#allocation3], 0 }
   0x4   :  { %19 = vsyncpa [#allocation3 + $0x1], 0 }
   0x5   :  { %20 = vsyncpa [#allocation6], 0 }
   0x6   :  { %21 = vsyncpa [#allocation4], 0 }
   0x7   :  { %23 = vsyncpa [#allocation4 + $0x1], 0  ;;  %s2187_s21 = smov 0   ;;  %s2189_s22 = smov 0  }
   0x8   :  { %s2191_s23 = smov 0   ;;  %s2193_s24 = smov 0  }
   0x9 LB: > { %2615 = sst [smem:[#allocation12_spill]] %s2098_s21  ;;  %s2208_s25 = sadd.s32 4294967295, %s2110_s24   ;;  %s2110_s24 = sphi %s2193_s24, %s2640_s24   ;;  %s2106_s23 = sphi %s2191_s23, %s2639_s23   ;;  %s2102_s22 = sphi %s2189_s22, %s2638_s22   ;;  %s2098_s21 = sphi %s2187_s21, %s2637_s21  }
   0xa   : > { %s1518_s26 = sadd.s32 4294967294, %s2110_s24   ;;  %p49_p0 = scmp.ne.s32.totalorder %s2102_s22, %s2098_s21 }
   0xb   : > { %p2606_p1 = scmp.eq.s32.totalorder %s2208_s25, 0  ;;  %p310_p3 = scmp.eq.s32.totalorder %s1518_s26, 1 }
   0xc   : > { %p1519_p5 = scmp.ge.s32.totalorder %s2110_s24, 1  ;;  %p317_p7 = scmp.lt.s32.totalorder %s2110_s24, 3 }
   0xd   : > { %p2217_p4 = por %p2606_p1, %p49_p0  ;;  %p2222_p6 = por %p310_p3, %p49_p0 }
   0xe   : > { %p2227_p8 = pnand %p1519_p5, %p317_p7  ;;  %s2112_s30 = smov [#allocation5]  }
   0xf   : > { %s2616_s27 = scalar_select %p2217_p4, 1, 0 }
  0x10   : > { %s2617_s28 = scalar_select %p2222_p6, 1, 0 }
  0x11   : > { %s332_s13 = sshll.u32 %s2112_s30, 4  ;;  %p1849_p9 = pneg %p2227_p8  ;;  %s2231_s13 = int_to_ptr.vmem [resolvable:$true] %s332_s13 }
  0x12   : > { %2618 = sst [smem:[#allocation13_spill]] %s2617_s28  ;;  %s2113_s15 = smov [#allocation7]  }
  0x13   : > { %p2238_p11 = pnand %p1849_p9, %p2606_p1  ;;  %s354_s16 = sshll.u32 %s2113_s15, 4  ;;  %s2242_s16 = int_to_ptr.vmem [resolvable:$true] %s354_s16 }
  0x14   : > { %s1954_s19 = scalar_lea.hbm %s2594_s2, 1536 }
  0x15   : > { %p1955_p12 = scmp.ne.s32.totalorder %s2594_s2, %s1954_s19  ;;  %p1956_p13 = pneg %p2238_p11 }
  0x16   : > { %p1961_p5 = scmp.lt.u32.totalorder %s1954_s19, %s2594_s2 }
  0x17   : > { %p1957_p0 = pnand %p1956_p13, %p1955_p12 }
  0x19   : > { %p1958_p3 = pneg %p1957_p0 }
  0x1b   : > { %p1963_p7 = pnand %p1961_p5, %p1958_p3 }
  0x1d   : > { %1966 = shalt.err (!%p1963_p7)
}
  0x1e   : > { %s1967_s15 = scalar_lea.vmem %s2231_s13, 1536  ;;  %p1975_p2 = scmp.lt.s32.totalorder %s2231_s13, %s2231_s13 }
  0x1f   : > { %p1968_p9 = scmp.ne.s32.totalorder %s2231_s13, %s1967_s15  ;;  %p1976_p12 = scmp.lt.s32.totalorder %s1967_s15, %s1967_s15 }
  0x21   : > { %p1970_p10 = pnand %p1968_p9, %p1956_p13  ;;  %p1977_p0 = por %p1976_p12, %p1975_p2 }
  0x23   : > { %p1971_p1 = pneg %p1970_p10 }
  0x25   : > { %p1978_p6 = pnand %p1977_p0, %p1971_p1 }
  0x27   : > { %1981 = shalt.err (!%p1978_p6)
}
  0x28   : > { %s2609_s28 = smov 64   ;;  %s2610_s17 = smov 4  }
  0x29   : > { %1852 = dma.hbm_to_vmem [thread:$0]  (!%p2238_p11), %s2594_s2, 1536, %s2231_s13, [#allocation6], %s2609_s28, %s2609_s28, %s2610_s17  }
  0x2a   : > { %s1982_s30 = scalar_lea.hbm %s2598_s6, 1536 }
  0x2b   : > { %p1983_p1 = scmp.ne.s32.totalorder %s2598_s6, %s1982_s30  ;;  %p1989_p10 = scmp.lt.u32.totalorder %s1982_s30, %s2598_s6 }
  0x2d   : > { %p1985_p2 = pnand %p1983_p1, %p1956_p13 }
  0x2f   : > { %p1986_p6 = pneg %p1985_p2 }
  0x31   : > { %p1991_p3 = pnand %p1989_p10, %p1986_p6 }
  0x33   : > { %1994 = shalt.err (!%p1991_p3)
}
  0x34   : > { %s1995_s13 = scalar_lea.vmem %s2242_s16, 1536  ;;  %p2003_p12 = scmp.lt.s32.totalorder %s2242_s16, %s2242_s16 }
  0x35   : > { %p1996_p5 = scmp.ne.s32.totalorder %s2242_s16, %s1995_s13  ;;  %p2004_p0 = scmp.lt.s32.totalorder %s1995_s13, %s1995_s13 }
  0x37   : > { %p1998_p7 = pnand %p1996_p5, %p1956_p13  ;;  %p2005_p1 = por %p2004_p0, %p2003_p12 }
  0x39   : > { %p1999_p9 = pneg %p1998_p7 }
  0x3b   : > { %p2006_p2 = pnand %p2005_p1, %p1999_p9 }
  0x3d   : > { %2009 = shalt.err (!%p2006_p2)
}
  0x3e   : > { %1855 = dma.hbm_to_vmem [thread:$0]  (!%p2238_p11), %s2598_s6, 1536, %s2242_s16, [#allocation6], %s2609_s28, %s2609_s28, %s2610_s17  }
  0x3f   : > { %s2303_s21 = sadd.s32 1, %s2110_s24   ;;  %s36_s14 = sadd.s32 1, %s2106_s23 }
  0x40   : > { %s33_s18 = ssub.s32 %s2110_s24, %s2303_s21  ;;  %p43_p13 = scmp.ne.s32.totalorder %s2106_s23, %s2102_s22 }
  0x41   : > { %p34_p6 = scmp.eq.s32.totalorder %s33_s18, 0  ;;  %p44_p10 = scmp.eq.s32.totalorder %s2110_s24, 0 }
  0x42   : > { %p2621_p3 = scmp.eq.s32.totalorder %s2208_s25, 1  ;;  %p1866_p7 = scmp.lt.s32.totalorder %s2110_s24, 2 }
  0x43   : > { %s2319_s20 = scalar_select %p34_p6, %s2106_s23, %s36_s14  }
  0x44   : > { %p2313_p5 = por %p2621_p3, %p43_p13  ;;  %p45_p9 = por %p44_p10, %p43_p13 }
  0x45   : > { %s383_s26 = sand.u32 1, %s2106_s23   ;;  %s1619_s16 = sshll.u32 %s2110_s24, 8 }
  0x46   : > { %s2622_s19 = scalar_select %p2313_p5, 1, 0 }
  0x47   : > { %s1523_s30 = sshll.u32 %s383_s26, 4  ;;  %s2326_s8 = scalar_lea.hbm %s2592_s0, %s1619_s16 }
  0x48   : > { %s387_s12 = scalar_lea.vmem [#allocation2], %s1523_s30  ;;  %p2330_p11 = pnand %p1866_p7, %p45_p9 }
  0x49   : > { %s395_s18 = sshll.u32 %s387_s12, 4  ;;  %s2334_s28 = scalar_lea.sflag [#allocation3], %s383_s26  ;;  %s2328_s18 = int_to_ptr.vmem [resolvable:$true] %s395_s18 }
  0x4a   : > { %s2010_s17 = scalar_lea.hbm %s2326_s8, 256  ;;  %p2012_p0 = pneg %p2330_p11 }
  0x4b   : > { %p2011_p12 = scmp.ne.s32.totalorder %s2326_s8, %s2010_s17  ;;  %s2015_s15 = scalar_lea.hbm %s2592_s0, 512 }
  0x4c   : > { %p2016_p13 = scmp.lt.u32.totalorder %s2326_s8, %s2592_s0  ;;  %p2017_p6 = scmp.lt.u32.totalorder %s2015_s15, %s2010_s17 }
  0x4d   : > { %p2013_p1 = pnand %p2012_p0, %p2011_p12  ;;  %p2019_p3 = scmp.lt.u32.totalorder %s2010_s17, %s2326_s8 }
  0x4e   : > { %p2018_p10 = por %p2017_p6, %p2016_p13 }
  0x4f   : > { %p2014_p2 = pneg %p2013_p1 }
  0x50   : > { %p2020_p7 = por %p2019_p3, %p2018_p10 }
  0x52   : > { %p2021_p9 = pnand %p2020_p7, %p2014_p2 }
  0x54   : > { %2024 = shalt.err (!%p2021_p9)
}
  0x55   : > { %s2025_s26 = scalar_lea.vmem %s2328_s18, 256  ;;  %s2116_s30 = smov [#allocation2]  }
  0x56   : > { %p2026_p12 = scmp.ne.s32.totalorder %s2328_s18, %s2025_s26  ;;  %s2030_s16 = sshll.u32 %s2116_s30, 4  ;;  %s2031_s16 = int_to_ptr.vmem [resolvable:$false] %s2030_s16 }
  0x57   : > { %s2032_s13 = scalar_lea.vmem %s2031_s16, 512  ;;  %p2033_p4 = scmp.lt.s32.totalorder %s2328_s18, %s2031_s16 }
  0x58   : > { %p2028_p1 = pnand %p2026_p12, %p2012_p0  ;;  %p2034_p13 = scmp.lt.s32.totalorder %s2032_s13, %s2025_s26 }
  0x5a   : > { %p2029_p5 = pneg %p2028_p1  ;;  %p2035_p6 = por %p2034_p13, %p2033_p4 }
  0x5c   : > { %p2036_p10 = pnand %p2035_p6, %p2029_p5 }
  0x5e   : > { %2039 = shalt.err (!%p2036_p10)
}
  0x5f   : > { %s2624_s17 = smov 4   ;;  %s2625_s15 = smov 64  }
  0x60   : > { %1859 = dma.hbm_to_vmem [thread:$0]  (!%p2330_p11), %s2326_s8, 256, %s2328_s18, %s2334_s28, %s2625_s15, %s2625_s15, %s2624_s17  }
  0x61   : > { %407 = sbr.rel (%p2227_p8) target bundleno = 1090 (0x442), region = 68  ;;  %s2368_s12 = sand.u32 (!%p2227_p8), 1, %s2102_s22  }
  0x62   : > { %s1528_s26 = sshll.u32 (!%p2227_p8), %s2368_s12, 4  ;;  %s410_s30 = scalar_lea.sflag (!%p2227_p8), [#allocation3], %s2368_s12 }
  0x63   : > { %s413_s14 = scalar_lea.vmem (!%p2227_p8), [#allocation2], %s1528_s26  ;;  %p2626_p4 = scmp.ne.s32.totalorder (!%p2227_p8), %s2616_s27, 0 }
  0x68   : > { %2085 = dma.done.wait (%p2626_p4), %s410_s30, 256  }
  0x69   : > { %2087 = vsyncadd (%p2626_p4), %s410_s30, 4294967040  ;;  %p2627_p5 = scmp.eq.s32.totalorder %s2208_s25, 0 }
  0x6b   : > { %2089 = dma.done.wait (%p2627_p5), [#allocation6], 3072   ;;  %p2628_p8 = pmov %p2627_p5 }
  0x6c   : > { %v2117_v0 = vmov 0.0   ;;  %vm2118_vm0 = vmmov 0   ;;  %v1910_v1 = vld [vmem:[%s413_s14] sm:$0xff]   ;;  %v1911_v2 = vld [vmem:[%s413_s14 + $0x8] sm:$0xff]   ;;  %vm502_vm1 = vcmask 261120   ;;  %vm613_vm2 = vcmask 523264  }
  0x6d   : > { %2091 = vsyncadd (%p2628_p8), [#allocation6], 4294964224  ;;  %1675 = vmatprep.subr.bf16.mxu1 %v2117_v0  ;;  %1679 = vmatprep.mubr.msk.bf16.mxu1 %vm2118_vm0, %v2117_v0  ;;  %v1912_v3 = vld [vmem:[%s2593_s1] sm:$0xff]   ;;  %v1913_v6 = vld [vmem:[%s2593_s1 + $0x8] sm:$0xff]   ;;  %vm1088_vm3 = vcmask 130048   ;;  %s2629_s18 = sld [smem:[#allocation14_spill]] }
  0x6e   : > { %1727 = vmatprep.subr.bf16.mxu0 %v2117_v0  ;;  %1735 = vmatprep.mubr.msk.bf16.mxu0 %vm2118_vm0, %v2117_v0  ;;  %v1915_v4 = vld [vmem:[#allocation5 + $0x20] sm:$0xff]   ;;  %v1914_v7 = vld [vmem:[%s2593_s1 + $0x10] sm:$0xff]   ;;  %v1917_v8 = vld [vmem:[#allocation5 + $0x28] sm:$0xff]   ;;  %s1620_s16 = sshll.u32 %s2208_s25, 8  ;;  %s461_s13 = scalar_lea.vmem [#allocation8], %s1528_s26 }
  0x6f   : > { %1676 = vmatpush3.bf16.msra.mxu1 %v1910_v1  ;;  %v1916_v5 = vld [vmem:[%s2601_s9 + $0x20] sm:$0xff]   ;;  %v1918_v9 = vld [vmem:[%s2601_s9 + $0x28] sm:$0xff]   ;;  %v1919_v10 = vld [vmem:[#allocation5 + $0x30] sm:$0xff]   ;;  %s1426_s17 = sshll.u32 %s461_s13, 4  ;;  %s2630_s14 = sld [smem:[#allocation15_spill]]  ;;  %s2546_s17 = int_to_ptr.vmem [resolvable:$true] %s1426_s17 }
  0x70   : > { %1677 = vmatprep.subr.bf16.mxu1 %v2117_v0  ;;  %1728 = vmatpush3.bf16.msra.mxu0 %v1916_v5  ;;  %v1920_v11 = vld [vmem:[%s2601_s9 + $0x30] sm:$0xff]   ;;  %v1921_v12 = vld [vmem:[#allocation5 + $0x38] sm:$0xff]   ;;  %v1923_v22 = vld [vmem:[#allocation5] sm:$0xff]   ;;  %s1413_s25 = scalar_lea.sflag [#allocation4], %s2368_s12  ;;  %s2040_s26 = scalar_lea.vmem %s2546_s17, 256 }
  0x71   : > { %1729 = vmatprep.subr.bf16.mxu0 %v2117_v0  ;;  %v1922_v13 = vld [vmem:[%s2601_s9 + $0x38] sm:$0xff]   ;;  %v1924_v23 = vld [vmem:[%s2601_s9] sm:$0xff]   ;;  %v1925_v26 = vld [vmem:[#allocation5 + $0x8] sm:$0xff]   ;;  %p2041_p11 = scmp.ne.s32.totalorder %s2546_s17, %s2040_s26  ;;  %p2631_p0 = scmp.ne.s32.totalorder %s2622_s19, 0 }
  0x72   : > { %v1926_v27 = vld [vmem:[%s2601_s9 + $0x8] sm:$0xff]   ;;  %v1927_v30 = vld [vmem:[#allocation5 + $0x10] sm:$0xff]   ;;  %v1929_v35 = vld [vmem:[#allocation5 + $0x18] sm:$0xff]   ;;  %s2119_s29 = smov [#allocation8]  }
  0x73   : > { %1678 = vmatpush3.bf16.msra.mxu1 %v1911_v2  ;;  %v1928_v31 = vld [vmem:[%s2601_s9 + $0x10] sm:$0xff]   ;;  %v1930_v36 = vld [vmem:[%s2601_s9 + $0x18] sm:$0xff]   ;;  %v1931_v37 = vld [vmem:[#allocation5 + $0x40] sm:$0xff]   ;;  %p2042_p2 = pnand %p2041_p11, %p2631_p0  ;;  %s2044_s28 = sshll.u32 %s2119_s29, 4  ;;  %s2045_s28 = int_to_ptr.vmem [resolvable:$false] %s2044_s28 }
  0x74   : > { %1691 = vmatprep.subr.bf16.mxu1 %v2117_v0  ;;  %1730 = vmatpush3.bf16.msra.mxu0 %v1918_v9  ;;  %v1932_v38 = vld [vmem:[%s2601_s9 + $0x40] sm:$0xff]   ;;  %v1933_v39 = vld [vmem:[#allocation5 + $0x48] sm:$0xff]   ;;  %v1935_v41 = vld [vmem:[#allocation5 + $0x50] sm:$0xff]   ;;  %s2046_s8 = scalar_lea.vmem %s2045_s28, 512  ;;  %p2047_p7 = scmp.lt.s32.totalorder %s2546_s17, %s2045_s28 }
  0x75   : > { %1731 = vmatprep.subr.bf16.mxu0 %v2117_v0  ;;  %v1934_v40 = vld [vmem:[%s2601_s9 + $0x48] sm:$0xff]   ;;  %v1936_v42 = vld [vmem:[%s2601_s9 + $0x50] sm:$0xff]   ;;  %v1937_v43 = vld [vmem:[#allocation5 + $0x58] sm:$0xff]   ;;  %s2544_s27 = scalar_lea.hbm %s2630_s14, %s1620_s16  ;;  %p2043_p3 = pneg %p2042_p2 }
  0x76   : > { %1680 = vmatmul.mubr.msk.bf16.vlgmr.msra.gmra.mrb[0].mxu1 %vm502_vm1, %v1912_v3  ;;  %v1938_v44 = vld [vmem:[%s2601_s9 + $0x58] sm:$0xff]   ;;  %v1942_v45 = vld [vmem:[#allocation7 + $0x20] sm:$0xff]   ;;  %v1943_v46 = vld [vmem:[#allocation7 + $0x28] sm:$0xff]   ;;  %p2048_p9 = scmp.lt.s32.totalorder %s2046_s8, %s2040_s26 }
  0x77   : > { %1683 = vmatprep.mubr.msk.bf16.mxu1 %vm2118_vm0, %v2117_v0  ;;  %1692 = vmatpush3.bf16.msra.mxu1 %v1915_v4  ;;  %v1586_v47 = vld [vmem:[%s2595_s3] ss:$0 sm:$0xff]  ;;  %v1940_v2 = vld [vmem:[%s2597_s5 + $0x8] sm:$0xff]   ;;  %v1941_v3 = vld [vmem:[%s2597_s5 + $0x10] sm:$0xff]  }
  0x78   : > { %1693 = vmatprep.subr.bf16.mxu1 %v2117_v0  ;;  %1732 = vmatpush3.bf16.msra.mxu0 %v1920_v11  ;;  %v1587_v49 = vld [vmem:[%s2596_s4] ss:$0 sm:$0xff]  ;;  %v1944_v4 = vld [vmem:[#allocation7 + $0x30] sm:$0xff]   ;;  %v1945_v5 = vld [vmem:[#allocation7 + $0x38] sm:$0xff]   ;;  %p2049_p12 = por %p2048_p9, %p2047_p7 }
  0x79   : > { %1733 = vmatprep.subr.bf16.mxu0 %v2117_v0  ;;  %v1939_v1 = vld [vmem:[%s2597_s5] sm:$0xff]  }
  0x7a   : > { %p2050_p1 = pnand %p2049_p12, %p2043_p3 }
  0x7b   : > { %1694 = vmatpush3.bf16.msra.mxu1 %v1917_v8 }
  0x7c   : > { %1695 = vmatprep.subr.bf16.mxu1 %v2117_v0  ;;  %1734 = vmatpush3.bf16.msra.mxu0 %v1922_v13 }
  0x7d   : > { %1739 = vmatprep.subr.bf16.mxu0 %v2117_v0 }
  0x7e   : > { %1684 = vmatmul.mubr.msk.bf16.gmra.mrb[4].mxu1 %vm502_vm1, %v1913_v6 }
  0x7f   : > { %1687 = vmatprep.mubr.msk.bf16.mxu1 %vm2118_vm0, %v2117_v0  ;;  %1696 = vmatpush3.bf16.msra.mxu1 %v1919_v10 }
  0x80   : > { %1697 = vmatprep.subr.bf16.mxu1 %v2117_v0 }
  0x83   : > { %1698 = vmatpush3.bf16.msra.mxu1 %v1921_v12 }
  0x84   : > { %1703 = vmatprep.subr.bf16.mxu1 %v2117_v0 }
  0x86   : > { %1688 = vmatmul.mubr.msk.bf16.gmra.mrb[8].mxu1 %vm502_vm1, %v1914_v7 }
  0x87   : > { %1699 = vmatprep.mubr.msk.bf16.mxu1 %vm2118_vm0, %v2117_v0 }
 0x149   : > { %v546_v14 = vpop.f32.mrb[0].mxu1 }
 0x14a   : > { %v1681_v15 = vpop.f32.mrb[1].mxu1 }
 0x14b   : > { %v549_v16 = vpop.f32.mrb[2].mxu1 }
 0x14c   : > { %v569_v17 = vpack.c.bf16 %v549_v16, %v546_v14  ;;  %v1682_v18 = vpop.f32.mrb[3].mxu1  ;;  %v1946_v14 = vld [vmem:[#allocation7] sm:$0xff]  }
 0x151   : > { %v554_v19 = vpop.f32.mrb[4].mxu1 }
 0x152   : > { %v1685_v20 = vpop.f32.mrb[5].mxu1 }
 0x153   : > { %v557_v21 = vpop.f32.mrb[6].mxu1  ;;  %v1948_v20 = vld [vmem:[#allocation7 + $0x10] sm:$0xff]  }
 0x154   : > { %v570_v24 = vpack.c.bf16 %v557_v21, %v554_v19  ;;  %v1686_v25 = vpop.f32.mrb[7].mxu1 }
 0x155   : > { %v1950_v25 = vld [vmem:[#allocation7 + $0x40] sm:$0xff]  }
 0x156   : > { %1700 = vmatmul.mubr.msk.bf16.vlgmr.msra.gmra.mrb[12].mxu1 %vm613_vm2, %v570_v24  ;;  %1736 = vmatmul.mubr.msk.bf16.vlgmr.msra.gmra.mrb[0].mxu0 %vm613_vm2, %v570_v24  ;;  %v1949_v24 = vld [vmem:[#allocation7 + $0x18] sm:$0xff]  }
 0x157   : > { %1704 = vmatpush3.bf16.msra.mxu1 %v1923_v22  ;;  %1740 = vmatpush3.bf16.msra.mxu0 %v1924_v23 }
 0x158   : > { %1705 = vmatprep.subr.bf16.mxu1 %v2117_v0  ;;  %1741 = vmatprep.subr.bf16.mxu0 %v2117_v0 }
 0x159   : > { %1711 = vmatprep.mubr.msk.bf16.mxu1 %vm2118_vm0, %v2117_v0  ;;  %1747 = vmatprep.mubr.msk.bf16.mxu0 %vm2118_vm0, %v2117_v0  ;;  %v562_v28 = vpop.f32.mrb[8].mxu1 }
 0x15a   : > { %v1689_v29 = vpop.f32.mrb[9].mxu1 }
 0x15b   : > { %1706 = vmatpush3.bf16.msra.mxu1 %v1925_v26  ;;  %1742 = vmatpush3.bf16.msra.mxu0 %v1926_v27  ;;  %v565_v32 = vpop.f32.mrb[10].mxu1  ;;  %v1951_v26 = vld [vmem:[#allocation7 + $0x48] sm:$0xff]   ;;  %v1952_v27 = vld [vmem:[#allocation7 + $0x50] sm:$0xff]   ;;  %v1588_v29 = vld [vmem:[%s2602_s10] ss:$0 sm:$0xff] }
 0x15c   : > { %1707 = vmatprep.subr.bf16.mxu1 %v2117_v0  ;;  %1743 = vmatprep.subr.bf16.mxu0 %v2117_v0  ;;  %v571_v33 = vpack.c.bf16 %v565_v32, %v562_v28  ;;  %v1690_v34 = vpop.f32.mrb[11].mxu1  ;;  %v1953_v28 = vld [vmem:[#allocation7 + $0x58] sm:$0xff]   ;;  %v1589_v32 = vld [vmem:[%s2603_s11] ss:$0 sm:$0xff] }
 0x15f   : > { %1708 = vmatpush3.bf16.msra.mxu1 %v1927_v30  ;;  %1744 = vmatpush3.bf16.msra.mxu0 %v1928_v31  ;;  %v1611_v30 = vld [vmem:[%s2599_s7] ss:$0 sm:$0xff] }
 0x160   : > { %1709 = vmatprep.subr.bf16.mxu1 %v2117_v0  ;;  %1745 = vmatprep.subr.bf16.mxu0 %v2117_v0 }
 0x163   : > { %1710 = vmatpush3.bf16.msra.mxu1 %v1929_v35  ;;  %1746 = vmatpush3.bf16.msra.mxu0 %v1930_v36 }
 0x164   : > { %1715 = vmatprep.subr.bf16.mxu1 %v2117_v0  ;;  %1751 = vmatprep.subr.bf16.mxu0 %v2117_v0 }
 0x166   : > { %1712 = vmatmul.mubr.msk.bf16.vlgmr.msra.gmra.mrb[12].mxu1 %vm613_vm2, %v569_v17  ;;  %1748 = vmatmul.mubr.msk.bf16.vlgmr.msra.gmra.mrb[0].mxu0 %vm613_vm2, %v569_v17  ;;  %v1947_v17 = vld [vmem:[#allocation7 + $0x8] sm:$0xff]  }
 0x167   : > { %1716 = vmatpush3.bf16.msra.mxu1 %v1931_v37  ;;  %1752 = vmatpush3.bf16.msra.mxu0 %v1932_v38 }
 0x168   : > { %1717 = vmatprep.subr.bf16.mxu1 %v2117_v0  ;;  %1753 = vmatprep.subr.bf16.mxu0 %v2117_v0 }
 0x169   : > { %1723 = vmatprep.mubr.msk.bf16.mxu1 %vm2118_vm0, %v2117_v0  ;;  %1759 = vmatprep.mubr.msk.bf16.mxu0 %vm2118_vm0, %v2117_v0 }
 0x16b   : > { %1718 = vmatpush3.bf16.msra.mxu1 %v1933_v39  ;;  %1754 = vmatpush3.bf16.msra.mxu0 %v1934_v40 }
 0x16c   : > { %1719 = vmatprep.subr.bf16.mxu1 %v2117_v0  ;;  %1755 = vmatprep.subr.bf16.mxu0 %v2117_v0 }
 0x16f   : > { %1720 = vmatpush3.bf16.msra.mxu1 %v1935_v41  ;;  %1756 = vmatpush3.bf16.msra.mxu0 %v1936_v42 }
 0x170   : > { %1721 = vmatprep.subr.bf16.mxu1 %v2117_v0  ;;  %1757 = vmatprep.subr.bf16.mxu0 %v2117_v0 }
 0x173   : > { %1722 = vmatpush3.bf16.msra.mxu1 %v1937_v43  ;;  %1758 = vmatpush3.bf16.msra.mxu0 %v1938_v44 }
 0x174   : > { %1763 = vmatprep.subr.bf16.mxu1 %v2117_v0  ;;  %1777 = vmatprep.subr.bf16.mxu0 %v2117_v0 }
 0x176   : > { %1724 = vmatmul.mubr.msk.bf16.vlgmr.msra.gmra.mrb[12].mxu1 %vm613_vm2, %v571_v33  ;;  %1760 = vmatmul.mubr.msk.bf16.vlgmr.msra.gmra.mrb[0].mxu0 %vm613_vm2, %v571_v33  ;;  %v1612_v33 = vld [vmem:[%s2629_s18] ss:$0 sm:$0xff] }
 0x177   : > { %1765 = vmatprep.mubr.msk.bf16.mxu1 %vm2118_vm0, %v2117_v0  ;;  %1785 = vmatprep.mubr.msk.bf16.mxu0 %vm2118_vm0, %v2117_v0 }
 0x178   : > { %1778 = vmatpush3.bf16.msra.mxu0 %v1942_v45 }
 0x179   : > { %1779 = vmatprep.subr.bf16.mxu0 %v2117_v0 }
 0x17c   : > { %1780 = vmatpush3.bf16.msra.mxu0 %v1943_v46 }
 0x17d   : > { %1781 = vmatprep.subr.bf16.mxu0 %v2117_v0 }
 0x180   : > { %1782 = vmatpush3.bf16.msra.mxu0 %v1944_v4 }
 0x181   : > { %1783 = vmatprep.subr.bf16.mxu0 %v2117_v0 }
 0x184   : > { %1784 = vmatpush3.bf16.msra.mxu0 %v1945_v5 }
 0x185   : > { %1789 = vmatprep.subr.bf16.mxu0 %v2117_v0 }
 0x249   : > { %v796_v48 = vpop.f32.mrb[12].mxu1  ;;  %v2491_v50 = vpop.f32.mrb[0].mxu0 }
 0x24a   : > { %v1035_v51 = vmul.f32 %v1586_v47, %v796_v48  ;;  %v1725_v52 = vpop.f32.mrb[13].mxu1  ;;  %v1761_v53 = vpop.f32.mrb[1].mxu0  ;;  %v1056_v31 = vmul.f32 %v1588_v29, %v2491_v50 }
 0x24b   : > { %v799_v54 = vpop.f32.mrb[14].mxu1  ;;  %v2493_v55 = vpop.f32.mrb[2].mxu0 }
 0x24c   : > { %v1044_v56 = vadd.f32 %v1587_v49, %v1035_v51  ;;  %v1036_v57 = vmul.f32 %v1586_v47, %v799_v54  ;;  %v1726_v58 = vpop.f32.mrb[15].mxu1  ;;  %v1762_v59 = vpop.f32.mrb[3].mxu0  ;;  %v1057_v34 = vmul.f32 %v1588_v29, %v2493_v55  ;;  %v1065_v38 = vadd.f32 %v1589_v32, %v1056_v31 }
 0x24e   : > { %v1045_v60 = vadd.f32 %v1587_v49, %v1036_v57  ;;  %v1046_v61 = vmax.f32 %v1044_v56, 0.0  ;;  %v1066_v42 = vadd.f32 %v1589_v32, %v1057_v34 }
 0x250   : > { %v1047_v62 = vmax.f32 %v1045_v60, 0.0 }
 0x252   : > { %v1048_v63 = vpack.c.bf16 %v1047_v62, %v1046_v61 }
 0x254   : > { %1764 = vmatpush3.bf16.msra.mxu1 %v1048_v63 }
 0x257   : > { %1766 = vmatmul.mubr.msk.bf16.vlgmr.msra.gmra.mrb[16].mxu1 %vm1088_vm3, %v1939_v1 }
 0x258   : > { %1769 = vmatprep.mubr.msk.bf16.mxu1 %vm2118_vm0, %v2117_v0 }
 0x25f   : > { %1770 = vmatmul.mubr.msk.bf16.gmra.mrb[20].mxu1 %vm1088_vm3, %v1940_v2 }
 0x260   : > { %1773 = vmatprep.mubr.msk.bf16.mxu1 %vm2118_vm0, %v2117_v0 }
 0x267   : > { %1774 = vmatmul.mubr.msk.bf16.gmra.mrb[24].mxu1 %vm1088_vm3, %v1941_v3 }
 0x32a   : > { %v1132_v6 = vpop.f32.mrb[16].mxu1 }
 0x32b   : > { %v1767_v7 = vpop.f32.mrb[17].mxu1 }
 0x32c   : > { %v1135_v8 = vpop.f32.mrb[18].mxu1 }
 0x32d   : > { %v1155_v9 = vpack.c.bf16 %v1135_v8, %v1132_v6  ;;  %v1768_v10 = vpop.f32.mrb[19].mxu1 }
 0x332   : > { %v1140_v11 = vpop.f32.mrb[20].mxu1 }
 0x333   : > { %v1771_v12 = vpop.f32.mrb[21].mxu1 }
 0x334   : > { %v1143_v13 = vpop.f32.mrb[22].mxu1 }
 0x335   : > { %v1156_v15 = vpack.c.bf16 %v1143_v13, %v1140_v11  ;;  %v1772_v16 = vpop.f32.mrb[23].mxu1 }
 0x337   : > { %1786 = vmatmul.mubr.msk.bf16.vlgmr.msra.gmra.mrb[4].mxu0 %vm613_vm2, %v1156_v15 }
 0x338   : > { %1790 = vmatpush3.bf16.msra.mxu0 %v1946_v14  ;;  %1797 = vmatprep.mubr.msk.bf16.mxu0 %vm2118_vm0, %v2117_v0 }
 0x339   : > { %1791 = vmatprep.subr.bf16.mxu0 %v2117_v0 }
 0x33a   : > { %v1148_v18 = vpop.f32.mrb[24].mxu1 }
 0x33b   : > { %v1775_v19 = vpop.f32.mrb[25].mxu1 }
 0x33c   : > { %1792 = vmatpush3.bf16.msra.mxu0 %v1947_v17  ;;  %v1151_v21 = vpop.f32.mrb[26].mxu1 }
 0x33d   : > { %1793 = vmatprep.subr.bf16.mxu0 %v2117_v0  ;;  %v1157_v22 = vpack.c.bf16 %v1151_v21, %v1148_v18  ;;  %v1776_v23 = vpop.f32.mrb[27].mxu1 }
 0x340   : > { %1794 = vmatpush3.bf16.msra.mxu0 %v1948_v20 }
 0x341   : > { %1795 = vmatprep.subr.bf16.mxu0 %v2117_v0 }
 0x344   : > { %1796 = vmatpush3.bf16.msra.mxu0 %v1949_v24 }
 0x345   : > { %1801 = vmatprep.subr.bf16.mxu0 %v2117_v0 }
 0x347   : > { %1798 = vmatmul.mubr.msk.bf16.vlgmr.msra.gmra.mrb[4].mxu0 %vm613_vm2, %v1155_v9 }
 0x348   : > { %1802 = vmatpush3.bf16.msra.mxu0 %v1950_v25  ;;  %1809 = vmatprep.mubr.msk.bf16.mxu0 %vm2118_vm0, %v2117_v0 }
 0x349   : > { %1803 = vmatprep.subr.bf16.mxu0 %v2117_v0 }
 0x34c   : > { %1804 = vmatpush3.bf16.msra.mxu0 %v1951_v26 }
 0x34d   : > { %1805 = vmatprep.subr.bf16.mxu0 %v2117_v0 }
 0x350   : > { %1806 = vmatpush3.bf16.msra.mxu0 %v1952_v27 }
 0x351   : > { %1807 = vmatprep.subr.bf16.mxu0 %v2117_v0 }
 0x354   : > { %1808 = vmatpush3.bf16.msra.mxu0 %v1953_v28 }
 0x357   : > { %1810 = vmatmul.mubr.msk.bf16.vlgmr.msra.gmra.mrb[4].mxu0 %vm613_vm2, %v1157_v22 }
 0x42a   : > { %v1381_v0 = vpop.f32.mrb[4].mxu0 }
 0x42b   : > { %v1397_v35 = vmul.f32 %v1611_v30, %v1381_v0  ;;  %v1811_v36 = vpop.f32.mrb[5].mxu0 }
 0x42c   : > { %v1384_v37 = vpop.f32.mrb[6].mxu0 }
 0x42d   : > { %v1406_v39 = vadd.f32 %v1612_v33, %v1397_v35  ;;  %v1398_v40 = vmul.f32 %v1611_v30, %v1384_v37  ;;  %v1812_v41 = vpop.f32.mrb[7].mxu0 }
 0x42f   : > { %v1408_v43 = vadd.f32 %v1406_v39, %v1065_v38  ;;  %v1407_v44 = vadd.f32 %v1612_v33, %v1398_v40 }
 0x431   : > { %1410 = vst.msk [vmem:[%s461_s13] sm:$0xff] %vm613_vm2, %v1408_v43  ;;  %v1409_v45 = vadd.f32 %v1407_v44, %v1066_v42 }
 0x433   : > { %1411 = vst.msk [vmem:[%s461_s13 + $0x8] sm:$0xff] %vm613_vm2, %v1409_v45 }
 0x434   : > { %2053 = shalt.err (!%p2050_p1)
}
 0x435   : > { %s2054_s18 = scalar_lea.hbm %s2544_s27, 256  ;;  %s2058_s15 = scalar_lea.hbm %s2630_s14, 512 }
 0x436   : > { %p2055_p13 = scmp.ne.s32.totalorder %s2544_s27, %s2054_s18  ;;  %p2059_p4 = scmp.lt.u32.totalorder %s2544_s27, %s2630_s14 }
 0x437   : > { %p2060_p5 = scmp.lt.u32.totalorder %s2058_s15, %s2054_s18  ;;  %p2062_p11 = scmp.lt.u32.totalorder %s2054_s18, %s2544_s27 }
 0x438   : > { %p2056_p6 = pnand %p2055_p13, %p2631_p0 }
 0x439   : > { %p2061_p8 = por %p2060_p5, %p2059_p4 }
 0x43a   : > { %p2057_p10 = pneg %p2056_p6 }
 0x43b   : > { %p2063_p2 = por %p2062_p11, %p2061_p8 }
 0x43d   : > { %p2064_p3 = pnand %p2063_p2, %p2057_p10 }
 0x43f   : > { %2067 = shalt.err (!%p2064_p3)
}
 0x440   : > { %s2120_s26 = smov 128   ;;  %s2121_s28 = smov 8  }
 0x441   : > { %1847 = dma.vmem_to_hbm [thread:$0]  (%p2631_p0), %s2546_s17, 256, %s2544_s27, %s1413_s25, %s2120_s26, %s2120_s26, %s2121_s28  }
 0x442 PF: > { %s2632_s8 = sld [smem:[#allocation12_spill]]  ;;  %s2633_s16 = sld [smem:[#allocation13_spill]] }
 0x443   : > { %p2635_p9 = scmp.ge.s32.totalorder %s2110_s24, 2 }
 0x448   : > { %s1441_s13 = sand.u32 1, %s2632_s8   ;;  %p2634_p7 = scmp.ne.s32.totalorder %s2633_s16, 0 }
 0x449   : > { %s1442_s18 = scalar_lea.sflag [#allocation4], %s1441_s13 }
 0x44a   : > { %p1861_p12 = pnand %p2635_p9, %p2634_p7 }
 0x44c   : > { %2093 = dma.done.wait (!%p1861_p12), %s1442_s18, 256  }
 0x44d   : > { %2095 = vsyncadd (!%p1861_p12), %s1442_s18, 4294967040  ;;  %s2636_s15 = smov %s2303_s21  ;;  %p26_p1 = scmp.ge.s32.totalorder %s2303_s21, 4  }
 0x44e   : > { %s2637_s21 = smov %s2102_s22  ;;  %s2638_s22 = smov %s2106_s23 }
 0x44f   : > { %s2639_s23 = smov %s2319_s20  ;;  %s2640_s24 = smov %s2636_s15 }
 0x450   :  { %28 = sbr.rel (!%p26_p1) target bundleno = 9 (0x9), region = 127 }
 0x457   :  { %1447 = vsyncpa [#allocation3], 1 }
 0x458   :  { %1449 = vsyncpa [#allocation3 + $0x1], 1 }
 0x459   :  { %1450 = vsyncpa [#allocation6], 1 }
 0x45a   :  { %1451 = vsyncpa [#allocation4], 1 }
 0x45b   :  { %1453 = vsyncpa [#allocation4 + $0x1], 1 }

</bundles_post_ra>
